<compile_context>
chip_gen: v7x
topology: tpu7x:2x2x1
jax: 0.10.0
libtpu: 0.0.40
codegen_flags: <defaults>
</compile_context>

<pallas_src>
import functools

import jax
import jax.numpy as jnp
from jax.experimental import pallas as pl
from jax.experimental.pallas import tpu as pltpu


def _round_up(n: int, m: int) -> int:
    return ((n + m - 1) // m) * m


def _cdiv(a: int, b: int) -> int:
    return -(-a // b)


# ----------------------------------------------------------------------------- math


def _geglu_partial(x, wv, bv, wg, bg, w2, *, use_tanh):
    """Partial GEGLU-FFN contribution for one inner-dim tile (f32 result)."""
    val = jnp.dot(x, wv, preferred_element_type=jnp.float32) + bv
    gate = jnp.dot(x, wg, preferred_element_type=jnp.float32) + bg
    if use_tanh:
        # tanh-approx GELU: goes to the EUP (free slot once MXU-bound). Slightly
        # deviates from torch's default approximate='none'.
        c = 0.7978845608028654  # sqrt(2/pi)
        gelu_gate = 0.5 * gate * (1.0 + jnp.tanh(c * (gate + 0.044715 * gate * gate * gate)))
    else:
        # Exact erf GELU, matching torch.nn.functional.gelu default.
        gelu_gate = 0.5 * gate * (1.0 + jax.lax.erf(gate * 0.7071067811865476))
    g = val * gelu_gate
    return jnp.dot(g.astype(w2.dtype), w2, preferred_element_type=jnp.float32)


# ---------------------------------------------------------------------------- kernels


def _ffn_geglu_stream_kernel(x_ref, wv_ref, bv_ref, wg_ref, bg_ref, w2_ref, b2_ref,
                             o_ref, acc_ref, *, use_tanh):
    # Streaming path: grid = (token tiles, inner tiles); acc over the inner axis.
    j = pl.program_id(1)

    @pl.when(j == 0)
    def _():
        acc_ref[...] = jnp.zeros_like(acc_ref)

    acc_ref[...] += _geglu_partial(x_ref[...], wv_ref[...], bv_ref[...],
                                   wg_ref[...], bg_ref[...], w2_ref[...],
                                   use_tanh=use_tanh)

    @pl.when(j == pl.num_programs(1) - 1)
    def _():
        o_ref[...] = (acc_ref[...] + b2_ref[...]).astype(o_ref.dtype)


def _ffn_geglu_resident_kernel(x_ref, wv_ref, bv_ref, wg_ref, bg_ref, w2_ref, b2_ref,
                               o_ref, acc_ref, *, ti, nj, use_tanh):
    # Weights-resident path: grid = (token tiles,); weights live whole in VMEM and
    # are sliced per inner tile inside the kernel (DMA'd from HBM only once).
    acc_ref[...] = jnp.zeros_like(acc_ref)
    x = x_ref[...]

    @pl.loop(0, nj, unroll=(nj <= 8))
    def _(j):
        off = pl.multiple_of(j * ti, ti)
        acc_ref[...] += _geglu_partial(
            x,
            wv_ref[:, pl.ds(off, ti)], bv_ref[:, pl.ds(off, ti)],
            wg_ref[:, pl.ds(off, ti)], bg_ref[:, pl.ds(off, ti)],
            w2_ref[pl.ds(off, ti), :],
            use_tanh=use_tanh)

    o_ref[...] = (acc_ref[...] + b2_ref[...]).astype(o_ref.dtype)


# ---------------------------------------------------------------------------- wrapper


def pack_ffn_geglu_params(w1, b1, w2, b2, *, matmul_dtype=jnp.bfloat16):
    """One-time weight pre-pack: split w1 into value/gate halves, cast to the MXU
    dtype and zero-pad every feature axis to a multiple of 128 (lane-dense).

    w1: (H, 2*inner) stored transposed (x @ w1 + b1);  w2: (inner, H) transposed.
    """
    H, two_inner = w1.shape
    inner = two_inner // 2
    assert w1.shape == (H, 2 * inner)
    assert w2.shape == (inner, H), (w2.shape, inner, H)

    mm = jnp.dtype(matmul_dtype)
    h_pad = _round_up(H, 128)
    inner_pad = _round_up(inner, 128)

    wv = jnp.pad(w1[:, :inner].astype(mm), ((0, h_pad - H), (0, inner_pad - inner)))
    wg = jnp.pad(w1[:, inner:].astype(mm), ((0, h_pad - H), (0, inner_pad - inner)))
    bv = jnp.pad(b1[:inner].astype(jnp.float32), (0, inner_pad - inner)).reshape(1, inner_pad)
    bg = jnp.pad(b1[inner:].astype(jnp.float32), (0, inner_pad - inner)).reshape(1, inner_pad)
    w2p = jnp.pad(w2.astype(mm), ((0, inner_pad - inner), (0, h_pad - H)))
    b2p = jnp.pad(b2.astype(jnp.float32), (0, h_pad - H)).reshape(1, h_pad)
    return dict(wv=wv, bv=bv, wg=wg, bg=bg, w2=w2p, b2=b2p)


def _default_weight_vmem_budget():
    # Fraction of per-core VMEM we allow the resident weights to occupy; the rest is
    # kept for double-buffered x/out tiles, the f32 accumulator and temporaries.
    try:
        info = pltpu.get_tpu_info()
        vmem = int(getattr(info, "vmem_capacity_bytes", 128 * 1024 * 1024))
    except Exception:
        vmem = 128 * 1024 * 1024
    return int(vmem * 0.45)


def feed_forward_geglu_packed(x, params, *, tm=512, t_inner=512,
                              force_streaming=False,
                              weight_vmem_budget_bytes=None,
                              gelu_approx="none",
                              vmem_limit_bytes=None):
    """FeedForwardGEGLU forward on pre-packed params (see pack_ffn_geglu_params)."""
    orig_dtype = x.dtype
    B, S, H = x.shape
    wv, bv, wg, bg, w2p, b2p = (params["wv"], params["bv"], params["wg"],
                                params["bg"], params["w2"], params["b2"])
    h_pad, inner_pad = wv.shape
    assert h_pad >= H and h_pad % 128 == 0
    mm_dtype = jnp.dtype(wv.dtype)
    mm_bytes = mm_dtype.itemsize
    out_bytes = jnp.dtype(orig_dtype).itemsize
    use_tanh = (gelu_approx == "tanh")

    sub = 16 if mm_bytes == 2 else 8  # min sublane multiple for the x tile
    N = B * S

    # ---- token tile: big (>=512 default) but clamped to the problem size, and
    # ---- kept to >= 2 tiles when tokens allow (v7x two-core split / pipelining).
    tm_eff = max(sub, _round_up(min(tm, _round_up(N, sub)), sub))
    if _cdiv(N, 2) >= 256:
        tm_eff = min(tm_eff, _round_up(_cdiv(N, 2), sub))
    n_pad = _round_up(N, tm_eff)
    nt = n_pad // tm_eff

    # ---- inner tile: largest multiple of 128 <= t_inner that divides inner_pad.
    ti_eff = max(128, min(_round_up(t_inner, 128), inner_pad))
    while inner_pad % ti_eff != 0:
        ti_eff -= 128
    nj = inner_pad // ti_eff

    # ---- per-call activation pad/cast (weights were packed once, outside).
    x2 = x.reshape(N, H)
    if x2.dtype != mm_dtype:
        x2 = x2.astype(mm_dtype)
    x2 = jnp.pad(x2, ((0, n_pad - N), (0, h_pad - H)))

    # ---- resident vs. streaming decision.
    weight_bytes = (wv.size + wg.size + w2p.size) * mm_bytes \
        + (bv.size + bg.size + b2p.size) * 4
    if weight_vmem_budget_bytes is None:
        weight_vmem_budget_bytes = _default_weight_vmem_budget()
    use_resident = (not force_streaming) and (weight_bytes <= weight_vmem_budget_bytes)

    # ---- VMEM limit derived from the actual tile footprint (v7x has only 64 MiB).
    footprint = (2 * tm_eff * h_pad * mm_bytes          # x, double-buffered
                 + 2 * tm_eff * h_pad * out_bytes       # out, double-buffered
                 + tm_eff * h_pad * 4                   # f32 accumulator
                 + 4 * tm_eff * ti_eff * 4)             # val/gate/g/partial temporaries
    if use_resident:
        footprint += weight_bytes
    else:
        footprint += 2 * (2 * h_pad * ti_eff + ti_eff * h_pad) * mm_bytes \
            + 2 * (2 * ti_eff + h_pad) * 4
    if vmem_limit_bytes is None:
        vmem_limit_bytes = int(min(127 << 20, max(32 << 20, footprint * 1.3 + (8 << 20))))

    cost = pl.CostEstimate(
        flops=int(6 * n_pad * h_pad * inner_pad),
        transcendentals=int(n_pad * inner_pad),
        bytes_accessed=int(x2.size * mm_bytes
                           + n_pad * h_pad * out_bytes
                           + weight_bytes * (1 if use_resident else nt)),
    )

    if use_resident:
        kern = functools.partial(_ffn_geglu_resident_kernel,
                                 ti=ti_eff, nj=nj, use_tanh=use_tanh)
        vmem_full = pl.BlockSpec(memory_space=pltpu.MemorySpace.VMEM)
        out = pl.pallas_call(
            kern,
            out_shape=jax.ShapeDtypeStruct((n_pad, h_pad), orig_dtype),
            grid_spec=pltpu.PrefetchScalarGridSpec(
                num_scalar_prefetch=0,
                grid=(nt,),
                in_specs=[
                    pl.BlockSpec((tm_eff, h_pad), lambda i: (i, 0)),  # x tile
                    vmem_full,   # W1 value half (whole, resident)
                    vmem_full,   # b1 value half
                    vmem_full,   # W1 gate half
                    vmem_full,   # b1 gate half
                    vmem_full,   # W2 (whole, resident)
                    vmem_full,   # b2
                ],
                out_specs=pl.BlockSpec((tm_eff, h_pad), lambda i: (i, 0)),
                scratch_shapes=[pltpu.VMEM((tm_eff, h_pad), jnp.float32)],
            ),
            compiler_params=pltpu.CompilerParams(
                dimension_semantics=("parallel",),
                vmem_limit_bytes=vmem_limit_bytes,
            ),
            cost_estimate=cost,
        )(x2, wv, bv, wg, bg, w2p, b2p)
    else:
        kern = functools.partial(_ffn_geglu_stream_kernel, use_tanh=use_tanh)
        out = pl.pallas_call(
            kern,
            out_shape=jax.ShapeDtypeStruct((n_pad, h_pad), orig_dtype),
            grid_spec=pltpu.PrefetchScalarGridSpec(
                num_scalar_prefetch=0,
                grid=(nt, nj),
                in_specs=[
                    pl.BlockSpec((tm_eff, h_pad), lambda i, j: (i, 0)),   # x tile
                    pl.BlockSpec((h_pad, ti_eff), lambda i, j: (0, j)),   # W1 value half
                    pl.BlockSpec((1, ti_eff), lambda i, j: (0, j)),       # b1 value half
                    pl.BlockSpec((h_pad, ti_eff), lambda i, j: (0, j)),   # W1 gate half
                    pl.BlockSpec((1, ti_eff), lambda i, j: (0, j)),       # b1 gate half
                    pl.BlockSpec((ti_eff, h_pad), lambda i, j: (j, 0)),   # W2 tile
                    pl.BlockSpec((1, h_pad), lambda i, j: (0, 0)),        # b2
                ],
                out_specs=pl.BlockSpec((tm_eff, h_pad), lambda i, j: (i, 0)),
                scratch_shapes=[pltpu.VMEM((tm_eff, h_pad), jnp.float32)],
            ),
            compiler_params=pltpu.CompilerParams(
                dimension_semantics=("parallel", "arbitrary"),
                vmem_limit_bytes=vmem_limit_bytes,
            ),
            cost_estimate=cost,
        )(x2, wv, bv, wg, bg, w2p, b2p)

    return out[:N, :H].reshape(B, S, H)


def feed_forward_geglu(x, w1, b1, w2, b2, *, matmul_dtype=None, **kwargs):
    """Convenience wrapper: packs weights then calls the packed forward.

    matmul_dtype defaults to bfloat16 for float32 inputs (f32 accumulation); pass
    jnp.float32 for the exact (slower) MXU path.  For serving, pack once with
    pack_ffn_geglu_params() and call feed_forward_geglu_packed() directly.
    """
    if matmul_dtype is None:
        matmul_dtype = jnp.bfloat16 if x.dtype == jnp.float32 else x.dtype
    packed = pack_ffn_geglu_params(w1, b1, w2, b2, matmul_dtype=matmul_dtype)
    return feed_forward_geglu_packed(x, packed, **kwargs)


# ----------------------------------------------------------------------------- test


def _init_linear(key, in_dim, out_dim, dtype=jnp.float32):
    # Deterministic init mimicking nn.Linear's uniform(-1/sqrt(in), 1/sqrt(in)).
    kw, kb = jax.random.split(key)
    bound = 1.0 / float(in_dim) ** 0.5
    # Stored transposed: (in_dim, out_dim) so the kernel does x @ W.
    w = jax.random.uniform(kw, (in_dim, out_dim), dtype, -bound, bound)
    b = jax.random.uniform(kb, (out_dim,), dtype, -bound, bound)
    return w, b


def _reference(x, w1, b1, w2, b2):
    B, S, H = x.shape
    inner = w2.shape[0]
    h = x.reshape(-1, H) @ w1 + b1
    val, gate = h[:, :inner], h[:, inner:]
    g = val * (0.5 * gate * (1.0 + jax.lax.erf(gate / jnp.sqrt(2.0))))
    return (g @ w2 + b2).reshape(B, S, H)


if __name__ == "__main__":
    key = jax.random.PRNGKey(0)

    # --- small config matching the module's toy shapes -----------------------
    hidden_dim, mult = 32, 4
    inner = mult * hidden_dim          # 128
    B, S = 2, 8                        # 16 tokens

    kx, k1, k2, kx2 = jax.random.split(key, 4)
    x = jax.random.normal(kx, (B, S, hidden_dim), jnp.float32)
    w1, b1 = _init_linear(k1, hidden_dim, 2 * inner)   # GEGLUproj.proj (transposed)
    w2, b2 = _init_linear(k2, inner, hidden_dim)       # final Linear (transposed)
    ref = _reference(x, w1, b1, w2, b2)

    # Exact f32-MXU path (strict correctness, resident weights auto-selected).
    out_f32 = jax.block_until_ready(
        feed_forward_geglu(x, w1, b1, w2, b2, matmul_dtype=jnp.float32))
    assert out_f32.shape == ref.shape
    assert jnp.allclose(out_f32, ref, atol=1e-4, rtol=1e-4), "f32 resident-path mismatch"

    # Default perf path: bf16 MXU inputs, pre-packed weights reused across jitted calls.
    packed = pack_ffn_geglu_params(w1, b1, w2, b2)          # bf16 by default
    fwd = jax.jit(feed_forward_geglu_packed)
    out_bf16 = jax.block_until_ready(fwd(x, packed))
    out_bf16 = jax.block_until_ready(fwd(x, packed))        # packed params reused
    assert jnp.allclose(out_bf16, ref, atol=1e-1, rtol=1e-1), "bf16 packed-path mismatch"

    # Streaming path forced on the small shape (covers the 2-D-grid kernel too).
    out_stream = jax.block_until_ready(
        feed_forward_geglu(x, w1, b1, w2, b2, matmul_dtype=jnp.float32,
                           force_streaming=True))
    assert jnp.allclose(out_stream, ref, atol=1e-4, rtol=1e-4), "f32 streaming mismatch"

    # --- slightly larger config: exercises the inner-dim reduction (nj = 2) ---
    hidden_dim2, mult2 = 128, 4
    inner2 = mult2 * hidden_dim2       # 512 -> nj = 2 with t_inner = 256
    B2, S2 = 2, 64                     # 128 tokens

    k1b, k2b = jax.random.split(k1)
    x_m = jax.random.normal(kx2, (B2, S2, hidden_dim2), jnp.float32)
    w1_m, b1_m = _init_linear(k1b, hidden_dim2, 2 * inner2)
    w2_m, b2_m = _init_linear(k2b, inner2, hidden_dim2)
    ref_m = _reference(x_m, w1_m, b1_m, w2_m, b2_m)

    out_m = jax.block_until_ready(
        feed_forward_geglu(x_m, w1_m, b1_m, w2_m, b2_m, matmul_dtype=jnp.float32,
                           force_streaming=True, t_inner=256))
    assert jnp.allclose(out_m, ref_m, atol=1e-4, rtol=1e-4), "f32 streaming accumulation mismatch"

    out_m_def = jax.block_until_ready(
        feed_forward_geglu(x_m, w1_m, b1_m, w2_m, b2_m))   # default: bf16 + resident
    assert jnp.allclose(out_m_def, ref_m, atol=2e-1, rtol=1e-1), "bf16 resident mismatch"

    print("KERNEL_OK")
</pallas_src>

<mosaic_0001>
module attributes {stable_mosaic.version = 11 : i64} {
  func.func @_ffn_geglu_resident_kernel(%arg0: i32, %arg1: memref<16x128xf32, #tpu.memory_space<vmem>>, %arg2: memref<128x128xf32, #tpu.memory_space<vmem>>, %arg3: memref<1x128xf32, #tpu.memory_space<vmem>>, %arg4: memref<128x128xf32, #tpu.memory_space<vmem>>, %arg5: memref<1x128xf32, #tpu.memory_space<vmem>>, %arg6: memref<128x128xf32, #tpu.memory_space<vmem>>, %arg7: memref<1x128xf32, #tpu.memory_space<vmem>>, %arg8: memref<16x128xf32, #tpu.memory_space<vmem>>, %arg9: memref<16x128xf32, #tpu.memory_space<vmem>>) attributes {dimension_semantics = [#tpu.dimension_semantics<parallel>], iteration_bounds = array<i64: 1>, scalar_prefetch = 0 : i64, scratch_operands = 1 : i64, tpu.core_type = #tpu.core_type<tc>, window_params = [{transform_indices = @transform_0, window_bounds = array<i64: 16, 128>}, {pipeline_mode = #tpu.pipeline_mode<synchronous>, transform_indices = @transform_1, window_bounds = array<i64: 128, 128>}, {pipeline_mode = #tpu.pipeline_mode<synchronous>, transform_indices = @transform_2, window_bounds = array<i64: 1, 128>}, {pipeline_mode = #tpu.pipeline_mode<synchronous>, transform_indices = @transform_3, window_bounds = array<i64: 128, 128>}, {pipeline_mode = #tpu.pipeline_mode<synchronous>, transform_indices = @transform_4, window_bounds = array<i64: 1, 128>}, {pipeline_mode = #tpu.pipeline_mode<synchronous>, transform_indices = @transform_5, window_bounds = array<i64: 128, 128>}, {pipeline_mode = #tpu.pipeline_mode<synchronous>, transform_indices = @transform_6, window_bounds = array<i64: 1, 128>}, {transform_indices = @transform_7, window_bounds = array<i64: 16, 128>}]} {
    %cst = arith.constant 0.000000e+00 : f32
    %0 = vector.broadcast %cst : f32 to vector<16x128xf32>
    %c0 = arith.constant 0 : index
    %c0_0 = arith.constant 0 : index
    %1 = vector.load %arg9[%c0, %c0_0] : memref<16x128xf32, #tpu.memory_space<vmem>>, vector<16x128xf32>
    tpu.vector_store %arg9[%c0, %c0_0], %0 {strides = array<i32>} : memref<16x128xf32, #tpu.memory_space<vmem>>, vector<16x128xf32>,
    %c0_1 = arith.constant 0 : index
    %c0_2 = arith.constant 0 : index
    %2 = vector.load %arg1[%c0_1, %c0_2] : memref<16x128xf32, #tpu.memory_space<vmem>>, vector<16x128xf32>
    %c0_i32 = arith.constant 0 : i32
    %c1_i32 = arith.constant 1 : i32
    %3 = arith.muli %c0_i32, %c1_i32 : i32
    %c0_i32_3 = arith.constant 0 : i32
    %4 = arith.addi %c0_i32_3, %3 : i32
    %c128_i32 = arith.constant 128 : i32
    %5 = arith.muli %4, %c128_i32 : i32
    %6 = tpu.assume_multiple %5, 128 : i32
    %c0_4 = arith.constant 0 : index
    %c0_5 = arith.constant 0 : index
    %7 = vector.load %arg9[%c0_4, %c0_5] : memref<16x128xf32, #tpu.memory_space<vmem>>, vector<16x128xf32>
    %c0_6 = arith.constant 0 : index
    %8 = arith.index_cast %6 : i32 to index
    %9 = vector.load %arg2[%c0_6, %8] : memref<128x128xf32, #tpu.memory_space<vmem>>, vector<128x128xf32>
    %c0_7 = arith.constant 0 : index
    %10 = arith.index_cast %6 : i32 to index
    %11 = vector.load %arg3[%c0_7, %10] : memref<1x128xf32, #tpu.memory_space<vmem>>, vector<1x128xf32>
    %c0_8 = arith.constant 0 : index
    %12 = arith.index_cast %6 : i32 to index
    %13 = vector.load %arg4[%c0_8, %12] : memref<128x128xf32, #tpu.memory_space<vmem>>, vector<128x128xf32>
    %c0_9 = arith.constant 0 : index
    %14 = arith.index_cast %6 : i32 to index
    %15 = vector.load %arg5[%c0_9, %14] : memref<1x128xf32, #tpu.memory_space<vmem>>, vector<1x128xf32>
    %16 = arith.index_cast %6 : i32 to index
    %c0_10 = arith.constant 0 : index
    %17 = vector.load %arg6[%16, %c0_10] : memref<128x128xf32, #tpu.memory_space<vmem>>, vector<128x128xf32>
    %cst_11 = arith.constant dense<0.000000e+00> : vector<16x128xf32>
    %18 = tpu.matmul %2, %9, %cst_11 {dimension_numbers = #tpu.dot_dimension_numbers<[1], [0], [0], [1], [0, 0, 1, 1], [], []>} : vector<16x128xf32>, vector<128x128xf32>, vector<16x128xf32> -> vector<16x128xf32>
    %19 = vector.broadcast %11 : vector<1x128xf32> to vector<16x128xf32>
    %20 = arith.addf %18, %19 : vector<16x128xf32>
    %cst_12 = arith.constant dense<0.000000e+00> : vector<16x128xf32>
    %21 = tpu.matmul %2, %13, %cst_12 {dimension_numbers = #tpu.dot_dimension_numbers<[1], [0], [0], [1], [0, 0, 1, 1], [], []>} : vector<16x128xf32>, vector<128x128xf32>, vector<16x128xf32> -> vector<16x128xf32>
    %22 = vector.broadcast %15 : vector<1x128xf32> to vector<16x128xf32>
    %23 = arith.addf %21, %22 : vector<16x128xf32>
    %cst_13 = arith.constant 5.000000e-01 : f32
    %24 = vector.broadcast %cst_13 : f32 to vector<16x128xf32>
    %25 = arith.mulf %24, %23 : vector<16x128xf32>
    %cst_14 = arith.constant 0.707106769 : f32
    %26 = vector.broadcast %cst_14 : f32 to vector<16x128xf32>
    %27 = arith.mulf %23, %26 : vector<16x128xf32>
    %28 = math.erf %27 : vector<16x128xf32>
    %cst_15 = arith.constant 1.000000e+00 : f32
    %29 = vector.broadcast %cst_15 : f32 to vector<16x128xf32>
    %30 = arith.addf %29, %28 : vector<16x128xf32>
    %31 = arith.mulf %25, %30 : vector<16x128xf32>
    %32 = arith.mulf %20, %31 : vector<16x128xf32>
    %cst_16 = arith.constant dense<0.000000e+00> : vector<16x128xf32>
    %33 = tpu.matmul %32, %17, %cst_16 {dimension_numbers = #tpu.dot_dimension_numbers<[1], [0], [0], [1], [0, 0, 1, 1], [], []>} : vector<16x128xf32>, vector<128x128xf32>, vector<16x128xf32> -> vector<16x128xf32>
    %34 = arith.addf %7, %33 : vector<16x128xf32>
    %c0_17 = arith.constant 0 : index
    %c0_18 = arith.constant 0 : index
    %35 = vector.load %arg9[%c0_17, %c0_18] : memref<16x128xf32, #tpu.memory_space<vmem>>, vector<16x128xf32>
    tpu.vector_store %arg9[%c0_17, %c0_18], %34 {strides = array<i32>} : memref<16x128xf32, #tpu.memory_space<vmem>>, vector<16x128xf32>,
    %c1_i32_19 = arith.constant 1 : i32
    %c0_20 = arith.constant 0 : index
    %c0_21 = arith.constant 0 : index
    %36 = vector.load %arg9[%c0_20, %c0_21] : memref<16x128xf32, #tpu.memory_space<vmem>>, vector<16x128xf32>
    %c0_22 = arith.constant 0 : index
    %c0_23 = arith.constant 0 : index
    %37 = vector.load %arg7[%c0_22, %c0_23] : memref<1x128xf32, #tpu.memory_space<vmem>>, vector<1x128xf32>
    %38 = vector.broadcast %37 : vector<1x128xf32> to vector<16x128xf32>
    %39 = arith.addf %36, %38 : vector<16x128xf32>
    %c0_24 = arith.constant 0 : index
    %c0_25 = arith.constant 0 : index
    %40 = vector.load %arg8[%c0_24, %c0_25] : memref<16x128xf32, #tpu.memory_space<vmem>>, vector<16x128xf32>
    tpu.vector_store %arg8[%c0_24, %c0_25], %39 {strides = array<i32>} : memref<16x128xf32, #tpu.memory_space<vmem>>, vector<16x128xf32>,
    return
  }
  func.func @transform_0(%arg0: i32) -> (i32, i32) {
    %c0_i32 = arith.constant 0 : i32
    %c0_i32_0 = arith.constant 0 : i32
    return %arg0, %c0_i32 : i32, i32
  }
  func.func @transform_1(%arg0: i32) -> (i32, i32) {
    %c0_i32 = arith.constant 0 : i32
    %c0_i32_0 = arith.constant 0 : i32
    %c0_i32_1 = arith.constant 0 : i32
    return %c0_i32, %c0_i32_0 : i32, i32
  }
  func.func @transform_2(%arg0: i32) -> (i32, i32) {
    %c0_i32 = arith.constant 0 : i32
    %c0_i32_0 = arith.constant 0 : i32
    %c0_i32_1 = arith.constant 0 : i32
    return %c0_i32, %c0_i32_0 : i32, i32
  }
  func.func @transform_3(%arg0: i32) -> (i32, i32) {
    %c0_i32 = arith.constant 0 : i32
    %c0_i32_0 = arith.constant 0 : i32
    %c0_i32_1 = arith.constant 0 : i32
    return %c0_i32, %c0_i32_0 : i32, i32
  }
  func.func @transform_4(%arg0: i32) -> (i32, i32) {
    %c0_i32 = arith.constant 0 : i32
    %c0_i32_0 = arith.constant 0 : i32
    %c0_i32_1 = arith.constant 0 : i32
    return %c0_i32, %c0_i32_0 : i32, i32
  }
  func.func @transform_5(%arg0: i32) -> (i32, i32) {
    %c0_i32 = arith.constant 0 : i32
    %c0_i32_0 = arith.constant 0 : i32
    %c0_i32_1 = arith.constant 0 : i32
    return %c0_i32, %c0_i32_0 : i32, i32
  }
  func.func @transform_6(%arg0: i32) -> (i32, i32) {
    %c0_i32 = arith.constant 0 : i32
    %c0_i32_0 = arith.constant 0 : i32
    %c0_i32_1 = arith.constant 0 : i32
    return %c0_i32, %c0_i32_0 : i32, i32
  }
  func.func @transform_7(%arg0: i32) -> (i32, i32) {
    %c0_i32 = arith.constant 0 : i32
    %c0_i32_0 = arith.constant 0 : i32
    return %arg0, %c0_i32 : i32, i32
  }
}

</mosaic_0001>

<bundles_post_ra>
// kernel: tpu_custom_call.1
= control target key start
LH: loop header
LB: loop body
LE: loop exit
PB: predicated region body
PF: predicated region fallthrough
CT: control target
= control target key end

     0   :  { %12 = vsyncpa [#allocation4], 0  ;;  %s955_s0 = inlined_call_operand.hbm [shape: f32[16,128], index: 0, kind: input, shape index: {}]   ;;  %s956_s1 = inlined_call_operand.hbm [shape: f32[128,128], index: 1, kind: input, shape index: {}]   ;;  %s957_s2 = inlined_call_operand.vmem [shape: f32[1,128], index: 2, kind: input, shape index: {}]   ;;  %s958_s3 = inlined_call_operand.hbm [shape: f32[128,128], index: 3, kind: input, shape index: {}]   ;;  %s959_s4 = inlined_call_operand.vmem [shape: f32[1,128], index: 4, kind: input, shape index: {}]   ;;  %s960_s5 = inlined_call_operand.hbm [shape: f32[128,128], index: 5, kind: input, shape index: {}]   ;;  %s961_s6 = inlined_call_operand.vmem [shape: f32[1,128], index: 6, kind: input, shape index: {}]   ;;  %s962_s7 = inlined_call_operand.hbm [shape: f32[16,128], index: 7, kind: output, shape index: {}]  }
   0x1   :  { %13 = vsyncpa [#allocation7], 0 }
   0x2   :  { %14 = vsyncpa [#allocation10], 0 }
   0x3   :  { %15 = vsyncpa [#allocation5], 0  ;;  %s810_s24 = smov [#allocation6]   ;;  %s811_s26 = smov [#allocation3]  }
   0x4   :  { %s33_s25 = sshll.u32 %s810_s24, 4  ;;  %s21_s27 = sshll.u32 %s811_s26, 4  ;;  %s34_s25 = int_to_ptr.vmem [resolvable:$true] %s33_s25  ;;  %s857_s27 = int_to_ptr.vmem [resolvable:$true] %s21_s27 }
   0x5   :  { %s692_s30 = scalar_lea.hbm %s956_s1, 2048 }
   0x6   :  { %p693_p0 = scmp.ne.s32.totalorder %s956_s1, %s692_s30  ;;  %p696_p1 = scmp.lt.u32.totalorder %s692_s30, %s956_s1 }
   0x8   :  { %p698_p2 = pnand %p696_p1, %p693_p0 }
   0xa   :  { %701 = shalt.err (!%p698_p2)
}
   0xb   :  { %s702_s12 = scalar_lea.vmem %s34_s25, 2048  ;;  %p707_p4 = scmp.lt.s32.totalorder %s34_s25, %s34_s25 }
   0xc   :  { %p703_p3 = scmp.ne.s32.totalorder %s34_s25, %s702_s12  ;;  %p708_p5 = scmp.lt.s32.totalorder %s702_s12, %s702_s12 }
   0xe   :  { %p709_p6 = por %p708_p5, %p707_p4 }
  0x10   :  { %p710_p7 = pnand %p709_p6, %p703_p3 }
  0x12   :  { %713 = shalt.err (!%p710_p7)
}
  0x13   :  { %s812_s13 = smov 128   ;;  %s813_s14 = smov 8  }
  0x14   :  { %39 = dma.hbm_to_vmem [thread:$0]  %s956_s1, 2048, %s34_s25, [#allocation7], %s812_s13, %s812_s13, %s813_s14  }
  0x15   :  { %s714_s19 = scalar_lea.hbm %s955_s0, 256 }
  0x16   :  { %p715_p8 = scmp.ne.s32.totalorder %s955_s0, %s714_s19  ;;  %p718_p9 = scmp.lt.u32.totalorder %s714_s19, %s955_s0 }
  0x18   :  { %p720_p10 = pnand %p718_p9, %p715_p8 }
  0x1a   :  { %723 = shalt.err (!%p720_p10)
}
  0x1b   :  { %s724_s24 = scalar_lea.vmem %s857_s27, 256  ;;  %p729_p12 = scmp.lt.s32.totalorder %s857_s27, %s857_s27 }
  0x1c   :  { %p725_p11 = scmp.ne.s32.totalorder %s857_s27, %s724_s24  ;;  %p730_p13 = scmp.lt.s32.totalorder %s724_s24, %s724_s24 }
  0x1e   :  { %p731_p0 = por %p730_p13, %p729_p12 }
  0x20   :  { %p732_p1 = pnand %p731_p0, %p725_p11 }
  0x22   :  { %735 = shalt.err (!%p732_p1)
}
  0x23   :  { %27 = dma.hbm_to_vmem [thread:$0]  %s955_s0, 256, %s857_s27, [#allocation4], %s812_s13, %s812_s13, %s813_s14  }
  0x24   :  { %s814_s26 = smov [#allocation8]   ;;  %s815_s29 = smov [#allocation9]  }
  0x25   :  { %s47_s28 = sshll.u32 %s814_s26, 4  ;;  %s61_s30 = sshll.u32 %s815_s29, 4  ;;  %s48_s28 = int_to_ptr.vmem [resolvable:$true] %s47_s28  ;;  %s894_s30 = int_to_ptr.vmem [resolvable:$true] %s61_s30 }
  0x26   :  { %s736_s10 = scalar_lea.hbm %s958_s3, 2048 }
  0x27   :  { %p737_p2 = scmp.ne.s32.totalorder %s958_s3, %s736_s10  ;;  %p740_p3 = scmp.lt.u32.totalorder %s736_s10, %s958_s3 }
  0x29   :  { %p742_p4 = pnand %p740_p3, %p737_p2 }
  0x2b   :  { %745 = shalt.err (!%p742_p4)
}
  0x2c   :  { %s746_s0 = scalar_lea.vmem %s48_s28, 2048  ;;  %p751_p6 = scmp.lt.s32.totalorder %s48_s28, %s48_s28 }
  0x2d   :  { %p747_p5 = scmp.ne.s32.totalorder %s48_s28, %s746_s0  ;;  %p752_p7 = scmp.lt.s32.totalorder %s746_s0, %s746_s0 }
  0x2f   :  { %p753_p8 = por %p752_p7, %p751_p6 }
  0x31   :  { %p754_p9 = pnand %p753_p8, %p747_p5 }
  0x33   :  { %757 = shalt.err (!%p754_p9)
}
  0x34   :  { %53 = dma.hbm_to_vmem [thread:$0]  %s958_s3, 2048, %s48_s28, [#allocation7], %s812_s13, %s812_s13, %s813_s14  }
  0x35   :  { %s758_s20 = scalar_lea.hbm %s960_s5, 2048 }
  0x36   :  { %p759_p10 = scmp.ne.s32.totalorder %s960_s5, %s758_s20  ;;  %p762_p11 = scmp.lt.u32.totalorder %s758_s20, %s960_s5 }
  0x38   :  { %p764_p12 = pnand %p762_p11, %p759_p10 }
  0x3a   :  { %767 = shalt.err (!%p764_p12)
}
  0x3b   :  { %s768_s1 = scalar_lea.vmem %s894_s30, 2048  ;;  %p773_p0 = scmp.lt.s32.totalorder %s894_s30, %s894_s30 }
  0x3c   :  { %p769_p13 = scmp.ne.s32.totalorder %s894_s30, %s768_s1  ;;  %p774_p1 = scmp.lt.s32.totalorder %s768_s1, %s768_s1 }
  0x3e   :  { %p775_p2 = por %p774_p1, %p773_p0 }
  0x40   :  { %p776_p3 = pnand %p775_p2, %p769_p13 }
  0x42   :  { %779 = shalt.err (!%p776_p3)
}
  0x43   :  { %67 = dma.hbm_to_vmem [thread:$0]  %s960_s5, 2048, %s894_s30, [#allocation10], %s812_s13, %s812_s13, %s813_s14  }
  0x44   :  { %802 = dma.done.wait [#allocation4], 256  }
  0x45   :  { %803 = vsyncadd [#allocation4], 4294967040 }
  0x46   :  { %804 = dma.done.wait [#allocation7], 4096  }
  0x47   :  { %805 = vsyncadd [#allocation7], 4294963200 }
  0x48   :  { %806 = dma.done.wait [#allocation10], 2048  }
  0x49   :  { %807 = vsyncadd [#allocation10], 4294965248  ;;  %v105_v0 = vld [vmem:[#allocation8] sm:$0xff]  ;;  %v106_v1 = vld [vmem:[#allocation8 + $0x8] sm:$0xff]  ;;  %s816_s8 = smov [#allocation11]  }
  0x4a   :  { %v107_v2 = vld [vmem:[#allocation8 + $0x10] sm:$0xff]  ;;  %v617_v3 = vpack.c.bf16 %v106_v1, %v105_v0  ;;  %v108_v4 = vld [vmem:[#allocation8 + $0x18] sm:$0xff]  ;;  %v109_v6 = vld [vmem:[#allocation8 + $0x20] sm:$0xff] }
  0x4b   :  { %v621_v5 = vpack.c.bf16 %v108_v4, %v107_v2  ;;  %v110_v7 = vld [vmem:[#allocation8 + $0x28] sm:$0xff]  ;;  %v88_v8 = vld [vmem:[#allocation6] sm:$0xff]  ;;  %v90_v11 = vld [vmem:[#allocation6 + $0x10] sm:$0xff] }
  0x4c   :  { %618 = vmatprep.subr.bf16.mxu1 %v617_v3  ;;  %v89_v9 = vld [vmem:[#allocation6 + $0x8] sm:$0xff]  ;;  %v91_v12 = vld [vmem:[#allocation6 + $0x18] sm:$0xff]  ;;  %v625_v13 = vpack.c.bf16 %v110_v7, %v109_v6  ;;  %v92_v15 = vld [vmem:[#allocation6 + $0x20] sm:$0xff] }
  0x4d   :  { %620 = vmatpush3.bf16.msra.mxu1 %v617_v3  ;;  %v585_v10 = vpack.c.bf16 %v89_v9, %v88_v8  ;;  %v589_v14 = vpack.c.bf16 %v91_v12, %v90_v11  ;;  %v93_v16 = vld [vmem:[#allocation6 + $0x28] sm:$0xff]  ;;  %v111_v17 = vld [vmem:[#allocation8 + $0x30] sm:$0xff]  ;;  %v112_v18 = vld [vmem:[#allocation8 + $0x38] sm:$0xff] }
  0x4e   :  { %622 = vmatprep.subr.bf16.mxu1 %v621_v5  ;;  %v593_v19 = vpack.c.bf16 %v93_v16, %v92_v15  ;;  %v84_v20 = vld [vmem:[#allocation3] sm:$0xff]  ;;  %v629_v21 = vpack.c.bf16 %v112_v18, %v111_v17  ;;  %v95_v23 = vld [vmem:[#allocation6 + $0x38] sm:$0xff]  ;;  %v113_v24 = vld [vmem:[#allocation8 + $0x40] sm:$0xff] }
  0x4f   :  { %586 = vmatprep.subr.bf16.mxu0 %v585_v10  ;;  %v94_v22 = vld [vmem:[#allocation6 + $0x30] sm:$0xff]  ;;  %547 = vmatprep.mubr.f32.mxu1 %v84_v20  ;;  %v114_v25 = vld [vmem:[#allocation8 + $0x48] sm:$0xff]  ;;  %v96_v28 = vld [vmem:[#allocation6 + $0x40] sm:$0xff] }
  0x50   :  { %588 = vmatpush3.bf16.msra.mxu0 %v585_v10  ;;  %512 = vmatprep.mubr.f32.mxu0 %v84_v20  ;;  %v597_v26 = vpack.c.bf16 %v95_v23, %v94_v22  ;;  %v633_v27 = vpack.c.bf16 %v114_v25, %v113_v24  ;;  %v97_v29 = vld [vmem:[#allocation6 + $0x48] sm:$0xff]  ;;  %v115_v30 = vld [vmem:[#allocation8 + $0x50] sm:$0xff]  ;;  %v116_v31 = vld [vmem:[#allocation8 + $0x58] sm:$0xff] }
  0x51   :  { %624 = vmatpush3.bf16.msra.mxu1 %v621_v5  ;;  %590 = vmatprep.subr.bf16.mxu0 %v589_v14  ;;  %v601_v32 = vpack.c.bf16 %v97_v29, %v96_v28  ;;  %v637_v33 = vpack.c.bf16 %v116_v31, %v115_v30  ;;  %v98_v34 = vld [vmem:[#allocation6 + $0x50] sm:$0xff]  ;;  %v99_v35 = vld [vmem:[#allocation6 + $0x58] sm:$0xff]  ;;  %v117_v36 = vld [vmem:[#allocation8 + $0x60] sm:$0xff] }
  0x52   :  { %626 = vmatprep.subr.bf16.mxu1 %v625_v13  ;;  %v118_v37 = vld [vmem:[#allocation8 + $0x68] sm:$0xff]  ;;  %v605_v38 = vpack.c.bf16 %v99_v35, %v98_v34  ;;  %v100_v40 = vld [vmem:[#allocation6 + $0x60] sm:$0xff]  ;;  %v119_v42 = vld [vmem:[#allocation8 + $0x70] sm:$0xff] }
  0x53   :  { %v641_v39 = vpack.c.bf16 %v118_v37, %v117_v36  ;;  %v101_v41 = vld [vmem:[#allocation6 + $0x68] sm:$0xff]  ;;  %v120_v43 = vld [vmem:[#allocation8 + $0x78] sm:$0xff]  ;;  %v102_v46 = vld [vmem:[#allocation6 + $0x70] sm:$0xff] }
  0x54   :  { %592 = vmatpush3.bf16.msra.mxu0 %v589_v14  ;;  %v609_v44 = vpack.c.bf16 %v101_v41, %v100_v40  ;;  %v645_v45 = vpack.c.bf16 %v120_v43, %v119_v42  ;;  %v103_v47 = vld [vmem:[#allocation6 + $0x78] sm:$0xff]  ;;  %v122_v49 = vld [vmem:[#allocation9] sm:$0xff]  ;;  %v123_v50 = vld [vmem:[#allocation9 + $0x8] sm:$0xff] }
  0x55   :  { %628 = vmatpush3.bf16.msra.mxu1 %v625_v13  ;;  %594 = vmatprep.subr.bf16.mxu0 %v593_v19  ;;  %v613_v48 = vpack.c.bf16 %v103_v47, %v102_v46  ;;  %v85_v51 = vld [vmem:[#allocation3 + $0x8] sm:$0xff]  ;;  %v649_v52 = vpack.c.bf16 %v123_v50, %v122_v49  ;;  %v124_v53 = vld [vmem:[#allocation9 + $0x10] sm:$0xff]  ;;  %v126_v56 = vld [vmem:[#allocation9 + $0x20] sm:$0xff] }
  0x56   :  { %630 = vmatprep.subr.bf16.mxu1 %v629_v21  ;;  %v125_v54 = vld [vmem:[#allocation9 + $0x18] sm:$0xff]  ;;  %v127_v57 = vld [vmem:[#allocation9 + $0x28] sm:$0xff]  ;;  %v128_v59 = vld [vmem:[#allocation9 + $0x30] sm:$0xff] }
  0x57   :  { %v653_v55 = vpack.c.bf16 %v125_v54, %v124_v53  ;;  %v657_v58 = vpack.c.bf16 %v127_v57, %v126_v56  ;;  %v129_v60 = vld [vmem:[#allocation9 + $0x38] sm:$0xff]  ;;  %v130_v62 = vld [vmem:[#allocation9 + $0x40] sm:$0xff]  ;;  %v131_v63 = vld [vmem:[#allocation9 + $0x48] sm:$0xff] }
  0x58   :  { %596 = vmatpush3.bf16.msra.mxu0 %v593_v19  ;;  %v661_v61 = vpack.c.bf16 %v129_v60, %v128_v59  ;;  %v665_v0 = vpack.c.bf16 %v131_v63, %v130_v62  ;;  %v132_v1 = vld [vmem:[#allocation9 + $0x50] sm:$0xff]  ;;  %v133_v2 = vld [vmem:[#allocation9 + $0x58] sm:$0xff]  ;;  %v134_v4 = vld [vmem:[#allocation9 + $0x60] sm:$0xff] }
  0x59   :  { %632 = vmatpush3.bf16.msra.mxu1 %v629_v21  ;;  %598 = vmatprep.subr.bf16.mxu0 %v597_v26  ;;  %v669_v3 = vpack.c.bf16 %v133_v2, %v132_v1  ;;  %v135_v5 = vld [vmem:[#allocation9 + $0x68] sm:$0xff]  ;;  %v136_v7 = vld [vmem:[#allocation9 + $0x70] sm:$0xff]  ;;  %v137_v8 = vld [vmem:[#allocation9 + $0x78] sm:$0xff] }
  0x5a   :  { %634 = vmatprep.subr.bf16.mxu1 %v633_v27  ;;  %v673_v6 = vpack.c.bf16 %v135_v5, %v134_v4  ;;  %v677_v9 = vpack.c.bf16 %v137_v8, %v136_v7  ;;  %v424_v10 = vld [vmem:[%s959_s4] ss:$0 sm:$0xff] }
  0x5b   :  { %v423_v19 = vld [vmem:[%s957_s2] ss:$0 sm:$0xff]  ;;  %s409_s2 = sshll.u32 %s816_s8, 4  ;;  %s410_s2 = int_to_ptr.vmem [resolvable:$true] %s409_s2 }
  0x5c   :  { %600 = vmatpush3.bf16.msra.mxu0 %v597_v26  ;;  %s780_s9 = scalar_lea.vmem %s410_s2, 256  ;;  %p785_p5 = scmp.lt.s32.totalorder %s410_s2, %s410_s2 }
  0x5d   :  { %636 = vmatpush3.bf16.msra.mxu1 %v633_v27  ;;  %602 = vmatprep.subr.bf16.mxu0 %v601_v32  ;;  %p781_p4 = scmp.ne.s32.totalorder %s410_s2, %s780_s9  ;;  %p786_p6 = scmp.lt.s32.totalorder %s780_s9, %s780_s9 }
  0x5e   :  { %638 = vmatprep.subr.bf16.mxu1 %v637_v33 }
  0x5f   :  { %p787_p7 = por %p786_p6, %p785_p5 }
  0x60   :  { %604 = vmatpush3.bf16.msra.mxu0 %v601_v32  ;;  %v425_v32 = vld [vmem:[%s961_s6] ss:$0 sm:$0xff] }
  0x61   :  { %640 = vmatpush3.bf16.msra.mxu1 %v637_v33  ;;  %606 = vmatprep.subr.bf16.mxu0 %v605_v38  ;;  %p788_p8 = pnand %p787_p7, %p781_p4 }
  0x62   :  { %642 = vmatprep.subr.bf16.mxu1 %v641_v39 }
  0x64   :  { %608 = vmatpush3.bf16.msra.mxu0 %v605_v38 }
  0x65   :  { %644 = vmatpush3.bf16.msra.mxu1 %v641_v39  ;;  %610 = vmatprep.subr.bf16.mxu0 %v609_v44 }
  0x66   :  { %646 = vmatprep.subr.bf16.mxu1 %v645_v45 }
  0x68   :  { %612 = vmatpush3.bf16.msra.mxu0 %v609_v44 }
  0x69   :  { %648 = vmatpush3.bf16.msra.mxu1 %v645_v45  ;;  %614 = vmatprep.subr.bf16.mxu0 %v613_v48 }
  0x6c   :  { %548 = vmatmul.mubr.f32.vlgmr.msra.gmra.mrb[0].mxu1 %v85_v51  ;;  %616 = vmatpush3.bf16.msra.mxu0 %v613_v48 }
  0x6d   :  { %650 = vmatprep.subr.bf16.mxu0 %v649_v52 }
  0x6f   :  { %513 = vmatmul.mubr.f32.vlgmr.msra.gmra.mrb[0].mxu0 %v85_v51 }
  0x70   :  { %652 = vmatpush3.bf16.msra.mxu0 %v649_v52 }
  0x71   :  { %654 = vmatprep.subr.bf16.mxu0 %v653_v55 }
  0x74   :  { %656 = vmatpush3.bf16.msra.mxu0 %v653_v55 }
  0x75   :  { %658 = vmatprep.subr.bf16.mxu0 %v657_v58 }
  0x78   :  { %660 = vmatpush3.bf16.msra.mxu0 %v657_v58 }
  0x79   :  { %662 = vmatprep.subr.bf16.mxu0 %v661_v61 }
  0x7c   :  { %664 = vmatpush3.bf16.msra.mxu0 %v661_v61 }
  0x7d   :  { %666 = vmatprep.subr.bf16.mxu0 %v665_v0 }
  0x80   :  { %668 = vmatpush3.bf16.msra.mxu0 %v665_v0 }
  0x81   :  { %670 = vmatprep.subr.bf16.mxu0 %v669_v3 }
  0x84   :  { %672 = vmatpush3.bf16.msra.mxu0 %v669_v3 }
  0x85   :  { %674 = vmatprep.subr.bf16.mxu0 %v673_v6 }
  0x88   :  { %676 = vmatpush3.bf16.msra.mxu0 %v673_v6 }
  0x89   :  { %678 = vmatprep.subr.bf16.mxu0 %v677_v9 }
  0x8c   :  { %680 = vmatpush3.bf16.msra.mxu0 %v677_v9 }
 0x13f   :  { %v549_v11 = vpop.f32.mrb[0].mxu1 }
 0x140   :  { %v297_v12 = vadd.f32 %v549_v11, %v424_v10  ;;  %v291_v13 = vpop.f32.mrb[1].mxu1 }
 0x141   :  { %v292_v14 = vadd.f32 %v424_v10, %v291_v13 }
 0x142   :  { %v303_v15 = vmul.f32 0.70710677, %v297_v12  ;;  %v514_v16 = vpop.f32.mrb[0].mxu0  ;;  %v301_v22 = vmul.f32 0.5, %v297_v12 }
 0x143   :  { %v302_v17 = vmul.f32 0.70710677, %v292_v14  ;;  %v210_v18 = vpop.f32.mrb[1].mxu0  ;;  %v216_v24 = vadd.f32 %v514_v16, %v423_v19  ;;  %v300_v25 = vmul.f32 0.5, %v292_v14 }
 0x144   :  { %688 = verf.f32 %v303_v15  ;;  %v211_v27 = vadd.f32 %v423_v19, %v210_v18 }
 0x145   :  { %690 = verf.f32 %v302_v17 }
 0x14e   :  { %v689_v20 = vpop.eup %688 }
 0x14f   :  { %v691_v21 = vpop.eup %690  ;;  %v307_v23 = vadd.f32 1.0, %v689_v20 }
 0x150   :  { %v306_v26 = vadd.f32 1.0, %v691_v21 }
 0x151   :  { %v309_v28 = vmul.f32 %v307_v23, %v301_v22 }
 0x152   :  { %v308_v29 = vmul.f32 %v306_v26, %v300_v25 }
 0x153   :  { %v311_v30 = vmul.f32 %v309_v28, %v216_v24 }
 0x154   :  { %v310_v31 = vmul.f32 %v308_v29, %v211_v27 }
 0x156   :  { %582 = vmatprep.mubr.f32.mxu0 %v310_v31 }
 0x157   :  { %583 = vmatmul.mubr.f32.vlgmr.msra.gmra.mrb[2].mxu0 %v311_v30 }
 0x22a   :  { %v584_v33 = vpop.f32.mrb[2].mxu0 }
 0x22b   :  { %v401_v34 = vadd.f32 %v584_v33, %v425_v32  ;;  %v378_v35 = vpop.f32.mrb[3].mxu0 }
 0x22c   :  { %v400_v36 = vadd.f32 %v425_v32, %v378_v35 }
 0x22d   :  { %403 = vst [vmem:[#allocation11 + $0x8] sm:$0xff] %v401_v34 }
 0x22e   :  { %402 = vst [vmem:[#allocation11] sm:$0xff] %v400_v36 }
 0x22f   :  { %791 = shalt.err (!%p788_p8)
}
 0x230   :  { %s792_s6 = scalar_lea.hbm %s962_s7, 256 }
 0x231   :  { %p793_p9 = scmp.ne.s32.totalorder %s962_s7, %s792_s6  ;;  %p796_p10 = scmp.lt.u32.totalorder %s792_s6, %s962_s7 }
 0x233   :  { %p798_p11 = pnand %p796_p10, %p793_p9 }
 0x235   :  { %801 = shalt.err (!%p798_p11)
}
 0x236   :  { %415 = dma.vmem_to_hbm [thread:$0]  %s410_s2, 256, %s962_s7, [#allocation5], %s812_s13, %s812_s13, %s813_s14  }
 0x237   :  { %808 = dma.done.wait [#allocation5], 256  }
 0x238   :  { %809 = vsyncadd [#allocation5], 4294967040 }
 0x239   :  { %419 = vsyncpa [#allocation4], 1 }
 0x23a   :  { %420 = vsyncpa [#allocation7], 1 }
 0x23b   :  { %421 = vsyncpa [#allocation10], 1 }
 0x23c   :  { %422 = vsyncpa [#allocation5], 1 }

</bundles_post_ra>
